<compile_context>
chip_gen: v7x
topology: tpu7x:2x2x1
jax: 0.10.0
libtpu: 0.0.40
codegen_flags: <defaults>
</compile_context>

<pallas_src>
import functools

import jax
import jax.numpy as jnp
import numpy as np
from jax.experimental import pallas as pl
from jax.experimental.pallas import tpu as pltpu

LN_EPS = 1e-5     # nn.LayerNorm default eps
ATTN_EPS = 1e-6   # LinearAttention eps


# ----------------------------- kernel helpers ------------------------------ #
def _layer_norm(h, gamma, beta):
    """LayerNorm over the last (lane) dim of an (L, D) tile — single pass."""
    d = h.shape[-1]
    mean = jnp.sum(h, axis=-1, keepdims=True) * (1.0 / d)
    diff = h - mean
    var = jnp.sum(diff * diff, axis=-1, keepdims=True) * (1.0 / d)
    return diff * jax.lax.rsqrt(var + LN_EPS) * gamma + beta


def _feature_map(t):
    # elu(t) + 1  ==  t + 1  (t > 0)   /   exp(t)  (t <= 0)
    return jnp.where(t > 0, t + 1.0, jnp.exp(t))


# --------------------------------- kernel ----------------------------------- #
def encoder_kernel(x_ref, src_ref, mask_ref,
                   wq_ref, bq_ref, wk_ref, bk_ref, wv_ref, bv_ref,
                   wo_ref, bo_ref, ln1w_ref, ln1b_ref,
                   w1_ref, b1_ref, w2_ref, b2_ref, ln2w_ref, ln2b_ref,
                   o_ref):
    f32 = jnp.float32
    x = x_ref[...]                                                      # (L, D)
    src = src_ref[...]                                                  # (S, D)
    head_mask = mask_ref[...]                                           # (H*dk, H*dv)

    # ---- Q / K / V projections (MXU) ----
    q = jnp.dot(x,   wq_ref[...], preferred_element_type=f32) + bq_ref[...]   # (L, H*dk)
    k = jnp.dot(src, wk_ref[...], preferred_element_type=f32) + bk_ref[...]   # (S, H*dk)
    v = jnp.dot(src, wv_ref[...], preferred_element_type=f32) + bv_ref[...]   # (S, H*dv)

    qf = _feature_map(q)
    kf = _feature_map(k)

    # ---- linear attention, all heads at once ----
    # K^T @ V over all (d, m) pairs in one matmul (contract along tokens, no
    # explicit transpose), then keep only same-head (block-diagonal) entries.
    kv = jax.lax.dot_general(kf, v, (((0,), (0,)), ((), ())),
                             preferred_element_type=f32)               # (H*dk, H*dv)
    kv = kv * head_mask

    # Per-head normalizer broadcast directly onto the (L, H*dv) layout:
    #   den_full[l, j] = sum_d qf[l, d] * ksum[d] * [head(d) == head(j)]
    ksum = jnp.sum(kf, axis=0, keepdims=True)                           # (1, H*dk)
    den_full = jnp.dot(qf * ksum, head_mask,
                       preferred_element_type=f32)                      # (L, H*dv)
    z_full = 1.0 / (den_full + ATTN_EPS)

    new_vals = jnp.dot(qf, kv, preferred_element_type=f32) * z_full     # (L, H*dv)

    attn_out = (jnp.dot(new_vals, wo_ref[...], preferred_element_type=f32)
                + bo_ref[...])                                          # (L, D)

    # ---- residual + LayerNorm1 ----   (dropout p=0.0 → identity, omitted)
    x1 = _layer_norm(x + attn_out, ln1w_ref[...], ln1b_ref[...])

    # ---- feed-forward ----
    y = jnp.dot(x1, w1_ref[...], preferred_element_type=f32) + b1_ref[...]
    y = jnp.maximum(y, 0.0)                                             # relu
    y = jnp.dot(y, w2_ref[...], preferred_element_type=f32) + b2_ref[...]

    # ---- residual + LayerNorm2 ----
    o_ref[...] = _layer_norm(x1 + y, ln2w_ref[...], ln2b_ref[...])


# ------------------------------- wrapper ------------------------------------ #
_PARAM_ORDER = ("wq", "bq", "wk", "bk", "wv", "bv", "wo", "bo",
                "ln1w", "ln1b", "w1", "b1", "w2", "b2", "ln2w", "ln2b")


def _make_head_mask(n_heads, d_keys, d_values):
    hk, hv = n_heads * d_keys, n_heads * d_values
    row_h = np.arange(hk)[:, None] // d_keys
    col_h = np.arange(hv)[None, :] // d_values
    return jnp.asarray((row_h == col_h).astype(np.float32))


def encoder_layer(x, source, kp, *, n_heads, d_keys, d_values):
    """x: (N, L, d_model), source: (N, S, d_model) float32."""
    N, L, D = x.shape
    _, S, _ = source.shape
    params = [kp[name] for name in _PARAM_ORDER]
    head_mask = _make_head_mask(n_heads, d_keys, d_values)

    def const_spec(shape):  # parameters: same block every grid step
        nd = len(shape)
        return pl.BlockSpec(shape, lambda n, nd=nd: (0,) * nd)

    return pl.pallas_call(
        encoder_kernel,
        out_shape=jax.ShapeDtypeStruct((N, L, D), jnp.float32),
        grid=(N,),
        in_specs=[pl.BlockSpec((None, L, D), lambda n: (n, 0, 0)),
                  pl.BlockSpec((None, S, D), lambda n: (n, 0, 0)),
                  const_spec(head_mask.shape)]
                 + [const_spec(p.shape) for p in params],
        out_specs=pl.BlockSpec((None, L, D), lambda n: (n, 0, 0)),
        compiler_params=pltpu.CompilerParams(
            dimension_semantics=("parallel",)),
    )(x, source, head_mask, *params)


# --------------------------- parameter init --------------------------------- #
def init_params(key, d_model, n_heads, d_keys, d_values, d_ff):
    hk, hv = n_heads * d_keys, n_heads * d_values
    ks = jax.random.split(key, 10)

    def lin(k, out_f, in_f):  # PyTorch nn.Linear default init
        kw, kb = jax.random.split(k)
        s = 1.0 / np.sqrt(in_f)
        w = jax.random.uniform(kw, (out_f, in_f), jnp.float32, -s, s)
        b = jax.random.uniform(kb, (out_f,), jnp.float32, -s, s)
        return w, b

    wq, bq = lin(ks[0], hk, d_model)
    wk, bk = lin(ks[1], hk, d_model)
    wv, bv = lin(ks[2], hv, d_model)
    wo, bo = lin(ks[3], d_model, hv)
    w1, b1 = lin(ks[4], d_ff, d_model)
    w2, b2 = lin(ks[5], d_model, d_ff)
    ln1w = 1.0 + 0.1 * jax.random.normal(ks[6], (d_model,), jnp.float32)
    ln1b = 0.1 * jax.random.normal(ks[7], (d_model,), jnp.float32)
    ln2w = 1.0 + 0.1 * jax.random.normal(ks[8], (d_model,), jnp.float32)
    ln2b = 0.1 * jax.random.normal(ks[9], (d_model,), jnp.float32)

    torch_p = dict(wq=wq, bq=bq, wk=wk, bk=bk, wv=wv, bv=bv, wo=wo, bo=bo,
                   w1=w1, b1=b1, w2=w2, b2=b2,
                   ln1w=ln1w, ln1b=ln1b, ln2w=ln2w, ln2b=ln2b)

    kernel_p = dict(  # weights transposed to (in, out); vectors as (1, out)
        wq=wq.T, bq=bq[None, :], wk=wk.T, bk=bk[None, :],
        wv=wv.T, bv=bv[None, :], wo=wo.T, bo=bo[None, :],
        w1=w1.T, b1=b1[None, :], w2=w2.T, b2=b2[None, :],
        ln1w=ln1w[None, :], ln1b=ln1b[None, :],
        ln2w=ln2w[None, :], ln2b=ln2b[None, :],
    )
    return torch_p, kernel_p


# --------------------------- pure-JAX reference ------------------------------ #
def reference(x, source, p, *, n_heads, d_keys, d_values):
    hi = jax.lax.Precision.HIGHEST

    def linear(t, w, b):  # PyTorch layout: w (out, in)
        return jnp.einsum("nld,od->nlo", t, w, precision=hi) + b

    N, L, _ = x.shape
    S, H = source.shape[1], n_heads
    q = linear(x, p["wq"], p["bq"]).reshape(N, L, H, d_keys)
    k = linear(source, p["wk"], p["bk"]).reshape(N, S, H, d_keys)
    v = linear(source, p["wv"], p["bv"]).reshape(N, S, H, d_values)

    fm = lambda t: jnp.where(t > 0, t + 1.0, jnp.exp(t))  # elu + 1
    Q, K = fm(q), fm(k)
    KV = jnp.einsum("nshd,nshm->nhmd", K, v, precision=hi)
    Z = 1.0 / (jnp.einsum("nlhd,nhd->nlh", Q, K.sum(axis=1), precision=hi)
               + ATTN_EPS)
    V = jnp.einsum("nlhd,nhmd,nlh->nlhm", Q, KV, Z, precision=hi)
    attn = linear(V.reshape(N, L, H * d_values), p["wo"], p["bo"])

    def ln(t, w, b):
        m = t.mean(axis=-1, keepdims=True)
        var = ((t - m) ** 2).mean(axis=-1, keepdims=True)
        return (t - m) / jnp.sqrt(var + LN_EPS) * w + b

    x1 = ln(x + attn, p["ln1w"], p["ln1b"])
    y = jax.nn.relu(linear(x1, p["w1"], p["b1"]))
    y = linear(y, p["w2"], p["b2"])
    return ln(x1 + y, p["ln2w"], p["ln2b"])


# ----------------------------------- main ------------------------------------ #
if __name__ == "__main__":
    N, L, S = 2, 16, 24
    d_model, n_heads = 32, 4
    d_keys = d_values = d_model // n_heads
    d_ff = 2 * d_model

    key = jax.random.PRNGKey(0)
    kx, ksrc, kpar = jax.random.split(key, 3)
    x = jax.random.normal(kx, (N, L, d_model), dtype=jnp.float32)
    source = jax.random.normal(ksrc, (N, S, d_model), dtype=jnp.float32)
    torch_p, kernel_p = init_params(kpar, d_model, n_heads, d_keys, d_values, d_ff)

    out = encoder_layer(x, source, kernel_p, n_heads=n_heads,
                        d_keys=d_keys, d_values=d_values)
    out = jax.block_until_ready(out)

    ref = jax.block_until_ready(
        reference(x, source, torch_p, n_heads=n_heads,
                  d_keys=d_keys, d_values=d_values))

    max_err = float(jnp.max(jnp.abs(out - ref)))
    assert out.shape == (N, L, d_model)
    assert max_err < 1e-2, f"mismatch vs reference: {max_err}"

    print("KERNEL_OK")
</pallas_src>

<mosaic_0001>
module attributes {stable_mosaic.version = 11 : i64} {
  func.func @encoder_kernel(%arg0: i32, %arg1: memref<1x16x32xf32, #tpu.memory_space<vmem>>, %arg2: memref<1x24x32xf32, #tpu.memory_space<vmem>>, %arg3: memref<32x32xf32, #tpu.memory_space<vmem>>, %arg4: memref<32x32xf32, #tpu.memory_space<vmem>>, %arg5: memref<1x32xf32, #tpu.memory_space<vmem>>, %arg6: memref<32x32xf32, #tpu.memory_space<vmem>>, %arg7: memref<1x32xf32, #tpu.memory_space<vmem>>, %arg8: memref<32x32xf32, #tpu.memory_space<vmem>>, %arg9: memref<1x32xf32, #tpu.memory_space<vmem>>, %arg10: memref<32x32xf32, #tpu.memory_space<vmem>>, %arg11: memref<1x32xf32, #tpu.memory_space<vmem>>, %arg12: memref<1x32xf32, #tpu.memory_space<vmem>>, %arg13: memref<1x32xf32, #tpu.memory_space<vmem>>, %arg14: memref<32x64xf32, #tpu.memory_space<vmem>>, %arg15: memref<1x64xf32, #tpu.memory_space<vmem>>, %arg16: memref<64x32xf32, #tpu.memory_space<vmem>>, %arg17: memref<1x32xf32, #tpu.memory_space<vmem>>, %arg18: memref<1x32xf32, #tpu.memory_space<vmem>>, %arg19: memref<1x32xf32, #tpu.memory_space<vmem>>, %arg20: memref<1x16x32xf32, #tpu.memory_space<vmem>>) attributes {dimension_semantics = [#tpu.dimension_semantics<parallel>], iteration_bounds = array<i64: 2>, scalar_prefetch = 0 : i64, scratch_operands = 0 : i64, tpu.core_type = #tpu.core_type<tc>, window_params = [{transform_indices = @transform_0, window_bounds = array<i64: 1, 16, 32>}, {transform_indices = @transform_1, window_bounds = array<i64: 1, 24, 32>}, {pipeline_mode = #tpu.pipeline_mode<synchronous>, transform_indices = @transform_2, window_bounds = array<i64: 32, 32>}, {pipeline_mode = #tpu.pipeline_mode<synchronous>, transform_indices = @transform_3, window_bounds = array<i64: 32, 32>}, {pipeline_mode = #tpu.pipeline_mode<synchronous>, transform_indices = @transform_4, window_bounds = array<i64: 1, 32>}, {pipeline_mode = #tpu.pipeline_mode<synchronous>, transform_indices = @transform_5, window_bounds = array<i64: 32, 32>}, {pipeline_mode = #tpu.pipeline_mode<synchronous>, transform_indices = @transform_6, window_bounds = array<i64: 1, 32>}, {pipeline_mode = #tpu.pipeline_mode<synchronous>, transform_indices = @transform_7, window_bounds = array<i64: 32, 32>}, {pipeline_mode = #tpu.pipeline_mode<synchronous>, transform_indices = @transform_8, window_bounds = array<i64: 1, 32>}, {pipeline_mode = #tpu.pipeline_mode<synchronous>, transform_indices = @transform_9, window_bounds = array<i64: 32, 32>}, {pipeline_mode = #tpu.pipeline_mode<synchronous>, transform_indices = @transform_10, window_bounds = array<i64: 1, 32>}, {pipeline_mode = #tpu.pipeline_mode<synchronous>, transform_indices = @transform_11, window_bounds = array<i64: 1, 32>}, {pipeline_mode = #tpu.pipeline_mode<synchronous>, transform_indices = @transform_12, window_bounds = array<i64: 1, 32>}, {pipeline_mode = #tpu.pipeline_mode<synchronous>, transform_indices = @transform_13, window_bounds = array<i64: 32, 64>}, {pipeline_mode = #tpu.pipeline_mode<synchronous>, transform_indices = @transform_14, window_bounds = array<i64: 1, 64>}, {pipeline_mode = #tpu.pipeline_mode<synchronous>, transform_indices = @transform_15, window_bounds = array<i64: 64, 32>}, {pipeline_mode = #tpu.pipeline_mode<synchronous>, transform_indices = @transform_16, window_bounds = array<i64: 1, 32>}, {pipeline_mode = #tpu.pipeline_mode<synchronous>, transform_indices = @transform_17, window_bounds = array<i64: 1, 32>}, {pipeline_mode = #tpu.pipeline_mode<synchronous>, transform_indices = @transform_18, window_bounds = array<i64: 1, 32>}, {transform_indices = @transform_19, window_bounds = array<i64: 1, 16, 32>}]} {
    %c0 = arith.constant 0 : index
    %c0_0 = arith.constant 0 : index
    %c0_1 = arith.constant 0 : index
    %0 = vector.load %arg1[%c0, %c0_0, %c0_1] : memref<1x16x32xf32, #tpu.memory_space<vmem>>, vector<1x16x32xf32>
    %1 = vector.shape_cast %0 : vector<1x16x32xf32> to vector<16x32xf32>
    %c0_2 = arith.constant 0 : index
    %c0_3 = arith.constant 0 : index
    %c0_4 = arith.constant 0 : index
    %2 = vector.load %arg2[%c0_2, %c0_3, %c0_4] : memref<1x24x32xf32, #tpu.memory_space<vmem>>, vector<1x24x32xf32>
    %3 = vector.shape_cast %2 : vector<1x24x32xf32> to vector<24x32xf32>
    %c0_5 = arith.constant 0 : index
    %c0_6 = arith.constant 0 : index
    %4 = vector.load %arg3[%c0_5, %c0_6] : memref<32x32xf32, #tpu.memory_space<vmem>>, vector<32x32xf32>
    %c0_7 = arith.constant 0 : index
    %c0_8 = arith.constant 0 : index
    %5 = vector.load %arg4[%c0_7, %c0_8] : memref<32x32xf32, #tpu.memory_space<vmem>>, vector<32x32xf32>
    %cst = arith.constant dense<0.000000e+00> : vector<16x32xf32>
    %6 = tpu.matmul %1, %5, %cst {dimension_numbers = #tpu.dot_dimension_numbers<[1], [0], [0], [1], [0, 0, 1, 1], [], []>} : vector<16x32xf32>, vector<32x32xf32>, vector<16x32xf32> -> vector<16x32xf32>
    %c0_9 = arith.constant 0 : index
    %c0_10 = arith.constant 0 : index
    %7 = vector.load %arg5[%c0_9, %c0_10] : memref<1x32xf32, #tpu.memory_space<vmem>>, vector<1x32xf32>
    %8 = vector.broadcast %7 : vector<1x32xf32> to vector<16x32xf32>
    %9 = arith.addf %6, %8 : vector<16x32xf32>
    %c0_11 = arith.constant 0 : index
    %c0_12 = arith.constant 0 : index
    %10 = vector.load %arg6[%c0_11, %c0_12] : memref<32x32xf32, #tpu.memory_space<vmem>>, vector<32x32xf32>
    %cst_13 = arith.constant dense<0.000000e+00> : vector<24x32xf32>
    %11 = tpu.matmul %3, %10, %cst_13 {dimension_numbers = #tpu.dot_dimension_numbers<[1], [0], [0], [1], [0, 0, 1, 1], [], []>} : vector<24x32xf32>, vector<32x32xf32>, vector<24x32xf32> -> vector<24x32xf32>
    %c0_14 = arith.constant 0 : index
    %c0_15 = arith.constant 0 : index
    %12 = vector.load %arg7[%c0_14, %c0_15] : memref<1x32xf32, #tpu.memory_space<vmem>>, vector<1x32xf32>
    %13 = vector.broadcast %12 : vector<1x32xf32> to vector<24x32xf32>
    %14 = arith.addf %11, %13 : vector<24x32xf32>
    %c0_16 = arith.constant 0 : index
    %c0_17 = arith.constant 0 : index
    %15 = vector.load %arg8[%c0_16, %c0_17] : memref<32x32xf32, #tpu.memory_space<vmem>>, vector<32x32xf32>
    %cst_18 = arith.constant dense<0.000000e+00> : vector<24x32xf32>
    %16 = tpu.matmul %3, %15, %cst_18 {dimension_numbers = #tpu.dot_dimension_numbers<[1], [0], [0], [1], [0, 0, 1, 1], [], []>} : vector<24x32xf32>, vector<32x32xf32>, vector<24x32xf32> -> vector<24x32xf32>
    %c0_19 = arith.constant 0 : index
    %c0_20 = arith.constant 0 : index
    %17 = vector.load %arg9[%c0_19, %c0_20] : memref<1x32xf32, #tpu.memory_space<vmem>>, vector<1x32xf32>
    %18 = vector.broadcast %17 : vector<1x32xf32> to vector<24x32xf32>
    %19 = arith.addf %16, %18 : vector<24x32xf32>
    %cst_21 = arith.constant 0.000000e+00 : f32
    %20 = vector.broadcast %cst_21 : f32 to vector<16x32xf32>
    %21 = arith.cmpf ogt, %9, %20 : vector<16x32xf32>
    %cst_22 = arith.constant 1.000000e+00 : f32
    %22 = vector.broadcast %cst_22 : f32 to vector<16x32xf32>
    %23 = arith.addf %9, %22 : vector<16x32xf32>
    %24 = math.exp %9 : vector<16x32xf32>
    %25 = arith.select %21, %23, %24 : vector<16x32xi1>, vector<16x32xf32>
    %cst_23 = arith.constant 0.000000e+00 : f32
    %26 = vector.broadcast %cst_23 : f32 to vector<24x32xf32>
    %27 = arith.cmpf ogt, %14, %26 : vector<24x32xf32>
    %cst_24 = arith.constant 1.000000e+00 : f32
    %28 = vector.broadcast %cst_24 : f32 to vector<24x32xf32>
    %29 = arith.addf %14, %28 : vector<24x32xf32>
    %30 = math.exp %14 : vector<24x32xf32>
    %31 = arith.select %27, %29, %30 : vector<24x32xi1>, vector<24x32xf32>
    %cst_25 = arith.constant dense<0.000000e+00> : vector<32x32xf32>
    %32 = tpu.matmul %31, %19, %cst_25 {dimension_numbers = #tpu.dot_dimension_numbers<[0], [0], [1], [1], [0, 1, 1, 1], [], []>} : vector<24x32xf32>, vector<24x32xf32>, vector<32x32xf32> -> vector<32x32xf32>
    %33 = arith.mulf %32, %4 : vector<32x32xf32>
    %cst_26 = arith.constant dense<0.000000e+00> : vector<32xf32>
    %34 = vector.multi_reduction <add>, %31, %cst_26 [0] : vector<24x32xf32> to vector<32xf32>
    %35 = vector.shape_cast %34 : vector<32xf32> to vector<1x32xf32>
    %36 = vector.broadcast %35 : vector<1x32xf32> to vector<16x32xf32>
    %37 = arith.mulf %25, %36 : vector<16x32xf32>
    %cst_27 = arith.constant dense<0.000000e+00> : vector<16x32xf32>
    %38 = tpu.matmul %37, %4, %cst_27 {dimension_numbers = #tpu.dot_dimension_numbers<[1], [0], [0], [1], [0, 0, 1, 1], [], []>} : vector<16x32xf32>, vector<32x32xf32>, vector<16x32xf32> -> vector<16x32xf32>
    %cst_28 = arith.constant 9.99999997E-7 : f32
    %39 = vector.broadcast %cst_28 : f32 to vector<16x32xf32>
    %40 = arith.addf %38, %39 : vector<16x32xf32>
    %cst_29 = arith.constant 1.000000e+00 : f32
    %41 = vector.broadcast %cst_29 : f32 to vector<16x32xf32>
    %42 = arith.divf %41, %40 : vector<16x32xf32>
    %cst_30 = arith.constant dense<0.000000e+00> : vector<16x32xf32>
    %43 = tpu.matmul %25, %33, %cst_30 {dimension_numbers = #tpu.dot_dimension_numbers<[1], [0], [0], [1], [0, 0, 1, 1], [], []>} : vector<16x32xf32>, vector<32x32xf32>, vector<16x32xf32> -> vector<16x32xf32>
    %44 = arith.mulf %43, %42 : vector<16x32xf32>
    %c0_31 = arith.constant 0 : index
    %c0_32 = arith.constant 0 : index
    %45 = vector.load %arg10[%c0_31, %c0_32] : memref<32x32xf32, #tpu.memory_space<vmem>>, vector<32x32xf32>
    %cst_33 = arith.constant dense<0.000000e+00> : vector<16x32xf32>
    %46 = tpu.matmul %44, %45, %cst_33 {dimension_numbers = #tpu.dot_dimension_numbers<[1], [0], [0], [1], [0, 0, 1, 1], [], []>} : vector<16x32xf32>, vector<32x32xf32>, vector<16x32xf32> -> vector<16x32xf32>
    %c0_34 = arith.constant 0 : index
    %c0_35 = arith.constant 0 : index
    %47 = vector.load %arg11[%c0_34, %c0_35] : memref<1x32xf32, #tpu.memory_space<vmem>>, vector<1x32xf32>
    %48 = vector.broadcast %47 : vector<1x32xf32> to vector<16x32xf32>
    %49 = arith.addf %46, %48 : vector<16x32xf32>
    %50 = arith.addf %1, %49 : vector<16x32xf32>
    %c0_36 = arith.constant 0 : index
    %c0_37 = arith.constant 0 : index
    %51 = vector.load %arg12[%c0_36, %c0_37] : memref<1x32xf32, #tpu.memory_space<vmem>>, vector<1x32xf32>
    %c0_38 = arith.constant 0 : index
    %c0_39 = arith.constant 0 : index
    %52 = vector.load %arg13[%c0_38, %c0_39] : memref<1x32xf32, #tpu.memory_space<vmem>>, vector<1x32xf32>
    %cst_40 = arith.constant dense<0.000000e+00> : vector<16xf32>
    %53 = vector.multi_reduction <add>, %50, %cst_40 [1] : vector<16x32xf32> to vector<16xf32>
    %54 = vector.shape_cast %53 : vector<16xf32> to vector<16x1xf32>
    %cst_41 = arith.constant 3.125000e-02 : f32
    %55 = vector.broadcast %cst_41 : f32 to vector<16x1xf32>
    %56 = arith.mulf %54, %55 : vector<16x1xf32>
    %57 = vector.broadcast %56 : vector<16x1xf32> to vector<16x32xf32>
    %58 = arith.subf %50, %57 : vector<16x32xf32>
    %59 = arith.mulf %58, %58 : vector<16x32xf32>
    %cst_42 = arith.constant dense<0.000000e+00> : vector<16xf32>
    %60 = vector.multi_reduction <add>, %59, %cst_42 [1] : vector<16x32xf32> to vector<16xf32>
    %61 = vector.shape_cast %60 : vector<16xf32> to vector<16x1xf32>
    %cst_43 = arith.constant 3.125000e-02 : f32
    %62 = vector.broadcast %cst_43 : f32 to vector<16x1xf32>
    %63 = arith.mulf %61, %62 : vector<16x1xf32>
    %cst_44 = arith.constant 9.99999974E-6 : f32
    %64 = vector.broadcast %cst_44 : f32 to vector<16x1xf32>
    %65 = arith.addf %63, %64 : vector<16x1xf32>
    %66 = math.rsqrt %65 : vector<16x1xf32>
    %67 = vector.broadcast %66 : vector<16x1xf32> to vector<16x32xf32>
    %68 = arith.mulf %58, %67 : vector<16x32xf32>
    %69 = vector.broadcast %51 : vector<1x32xf32> to vector<16x32xf32>
    %70 = arith.mulf %68, %69 : vector<16x32xf32>
    %71 = vector.broadcast %52 : vector<1x32xf32> to vector<16x32xf32>
    %72 = arith.addf %70, %71 : vector<16x32xf32>
    %c0_45 = arith.constant 0 : index
    %c0_46 = arith.constant 0 : index
    %73 = vector.load %arg14[%c0_45, %c0_46] : memref<32x64xf32, #tpu.memory_space<vmem>>, vector<32x64xf32>
    %cst_47 = arith.constant dense<0.000000e+00> : vector<16x64xf32>
    %74 = tpu.matmul %72, %73, %cst_47 {dimension_numbers = #tpu.dot_dimension_numbers<[1], [0], [0], [1], [0, 0, 1, 1], [], []>} : vector<16x32xf32>, vector<32x64xf32>, vector<16x64xf32> -> vector<16x64xf32>
    %c0_48 = arith.constant 0 : index
    %c0_49 = arith.constant 0 : index
    %75 = vector.load %arg15[%c0_48, %c0_49] : memref<1x64xf32, #tpu.memory_space<vmem>>, vector<1x64xf32>
    %76 = vector.broadcast %75 : vector<1x64xf32> to vector<16x64xf32>
    %77 = arith.addf %74, %76 : vector<16x64xf32>
    %cst_50 = arith.constant 0.000000e+00 : f32
    %78 = vector.broadcast %cst_50 : f32 to vector<16x64xf32>
    %79 = arith.maximumf %77, %78 : vector<16x64xf32>
    %c0_51 = arith.constant 0 : index
    %c0_52 = arith.constant 0 : index
    %80 = vector.load %arg16[%c0_51, %c0_52] : memref<64x32xf32, #tpu.memory_space<vmem>>, vector<64x32xf32>
    %cst_53 = arith.constant dense<0.000000e+00> : vector<16x32xf32>
    %81 = tpu.matmul %79, %80, %cst_53 {dimension_numbers = #tpu.dot_dimension_numbers<[1], [0], [0], [1], [0, 0, 1, 1], [], []>} : vector<16x64xf32>, vector<64x32xf32>, vector<16x32xf32> -> vector<16x32xf32>
    %c0_54 = arith.constant 0 : index
    %c0_55 = arith.constant 0 : index
    %82 = vector.load %arg17[%c0_54, %c0_55] : memref<1x32xf32, #tpu.memory_space<vmem>>, vector<1x32xf32>
    %83 = vector.broadcast %82 : vector<1x32xf32> to vector<16x32xf32>
    %84 = arith.addf %81, %83 : vector<16x32xf32>
    %85 = arith.addf %72, %84 : vector<16x32xf32>
    %c0_56 = arith.constant 0 : index
    %c0_57 = arith.constant 0 : index
    %86 = vector.load %arg18[%c0_56, %c0_57] : memref<1x32xf32, #tpu.memory_space<vmem>>, vector<1x32xf32>
    %c0_58 = arith.constant 0 : index
    %c0_59 = arith.constant 0 : index
    %87 = vector.load %arg19[%c0_58, %c0_59] : memref<1x32xf32, #tpu.memory_space<vmem>>, vector<1x32xf32>
    %cst_60 = arith.constant dense<0.000000e+00> : vector<16xf32>
    %88 = vector.multi_reduction <add>, %85, %cst_60 [1] : vector<16x32xf32> to vector<16xf32>
    %89 = vector.shape_cast %88 : vector<16xf32> to vector<16x1xf32>
    %cst_61 = arith.constant 3.125000e-02 : f32
    %90 = vector.broadcast %cst_61 : f32 to vector<16x1xf32>
    %91 = arith.mulf %89, %90 : vector<16x1xf32>
    %92 = vector.broadcast %91 : vector<16x1xf32> to vector<16x32xf32>
    %93 = arith.subf %85, %92 : vector<16x32xf32>
    %94 = arith.mulf %93, %93 : vector<16x32xf32>
    %cst_62 = arith.constant dense<0.000000e+00> : vector<16xf32>
    %95 = vector.multi_reduction <add>, %94, %cst_62 [1] : vector<16x32xf32> to vector<16xf32>
    %96 = vector.shape_cast %95 : vector<16xf32> to vector<16x1xf32>
    %cst_63 = arith.constant 3.125000e-02 : f32
    %97 = vector.broadcast %cst_63 : f32 to vector<16x1xf32>
    %98 = arith.mulf %96, %97 : vector<16x1xf32>
    %cst_64 = arith.constant 9.99999974E-6 : f32
    %99 = vector.broadcast %cst_64 : f32 to vector<16x1xf32>
    %100 = arith.addf %98, %99 : vector<16x1xf32>
    %101 = math.rsqrt %100 : vector<16x1xf32>
    %102 = vector.broadcast %101 : vector<16x1xf32> to vector<16x32xf32>
    %103 = arith.mulf %93, %102 : vector<16x32xf32>
    %104 = vector.broadcast %86 : vector<1x32xf32> to vector<16x32xf32>
    %105 = arith.mulf %103, %104 : vector<16x32xf32>
    %106 = vector.broadcast %87 : vector<1x32xf32> to vector<16x32xf32>
    %107 = arith.addf %105, %106 : vector<16x32xf32>
    %c0_65 = arith.constant 0 : index
    %c0_66 = arith.constant 0 : index
    %c0_67 = arith.constant 0 : index
    %108 = vector.load %arg20[%c0_65, %c0_66, %c0_67] : memref<1x16x32xf32, #tpu.memory_space<vmem>>, vector<1x16x32xf32>
    %109 = vector.shape_cast %108 : vector<1x16x32xf32> to vector<16x32xf32>
    %110 = vector.shape_cast %107 : vector<16x32xf32> to vector<1x16x32xf32>
    tpu.vector_store %arg20[%c0_65, %c0_66, %c0_67], %110 {strides = array<i32>} : memref<1x16x32xf32, #tpu.memory_space<vmem>>, vector<1x16x32xf32>,
    return
  }
  func.func @transform_0(%arg0: i32) -> (i32, i32, i32) {
    %c0_i32 = arith.constant 0 : i32
    %c0_i32_0 = arith.constant 0 : i32
    %c0_i32_1 = arith.constant 0 : i32
    return %arg0, %c0_i32, %c0_i32_0 : i32, i32, i32
  }
  func.func @transform_1(%arg0: i32) -> (i32, i32, i32) {
    %c0_i32 = arith.constant 0 : i32
    %c0_i32_0 = arith.constant 0 : i32
    %c0_i32_1 = arith.constant 0 : i32
    return %arg0, %c0_i32, %c0_i32_0 : i32, i32, i32
  }
  func.func @transform_2(%arg0: i32) -> (i32, i32) {
    %c0_i32 = arith.constant 0 : i32
    %c0_i32_0 = arith.constant 0 : i32
    %c0_i32_1 = arith.constant 0 : i32
    return %c0_i32, %c0_i32_0 : i32, i32
  }
  func.func @transform_3(%arg0: i32) -> (i32, i32) {
    %c0_i32 = arith.constant 0 : i32
    %c0_i32_0 = arith.constant 0 : i32
    %c0_i32_1 = arith.constant 0 : i32
    return %c0_i32, %c0_i32_0 : i32, i32
  }
  func.func @transform_4(%arg0: i32) -> (i32, i32) {
    %c0_i32 = arith.constant 0 : i32
    %c0_i32_0 = arith.constant 0 : i32
    %c0_i32_1 = arith.constant 0 : i32
    return %c0_i32, %c0_i32_0 : i32, i32
  }
  func.func @transform_5(%arg0: i32) -> (i32, i32) {
    %c0_i32 = arith.constant 0 : i32
    %c0_i32_0 = arith.constant 0 : i32
    %c0_i32_1 = arith.constant 0 : i32
    return %c0_i32, %c0_i32_0 : i32, i32
  }
  func.func @transform_6(%arg0: i32) -> (i32, i32) {
    %c0_i32 = arith.constant 0 : i32
    %c0_i32_0 = arith.constant 0 : i32
    %c0_i32_1 = arith.constant 0 : i32
    return %c0_i32, %c0_i32_0 : i32, i32
  }
  func.func @transform_7(%arg0: i32) -> (i32, i32) {
    %c0_i32 = arith.constant 0 : i32
    %c0_i32_0 = arith.constant 0 : i32
    %c0_i32_1 = arith.constant 0 : i32
    return %c0_i32, %c0_i32_0 : i32, i32
  }
  func.func @transform_8(%arg0: i32) -> (i32, i32) {
    %c0_i32 = arith.constant 0 : i32
    %c0_i32_0 = arith.constant 0 : i32
    %c0_i32_1 = arith.constant 0 : i32
    return %c0_i32, %c0_i32_0 : i32, i32
  }
  func.func @transform_9(%arg0: i32) -> (i32, i32) {
    %c0_i32 = arith.constant 0 : i32
    %c0_i32_0 = arith.constant 0 : i32
    %c0_i32_1 = arith.constant 0 : i32
    return %c0_i32, %c0_i32_0 : i32, i32
  }
  func.func @transform_10(%arg0: i32) -> (i32, i32) {
    %c0_i32 = arith.constant 0 : i32
    %c0_i32_0 = arith.constant 0 : i32
    %c0_i32_1 = arith.constant 0 : i32
    return %c0_i32, %c0_i32_0 : i32, i32
  }
  func.func @transform_11(%arg0: i32) -> (i32, i32) {
    %c0_i32 = arith.constant 0 : i32
    %c0_i32_0 = arith.constant 0 : i32
    %c0_i32_1 = arith.constant 0 : i32
    return %c0_i32, %c0_i32_0 : i32, i32
  }
  func.func @transform_12(%arg0: i32) -> (i32, i32) {
    %c0_i32 = arith.constant 0 : i32
    %c0_i32_0 = arith.constant 0 : i32
    %c0_i32_1 = arith.constant 0 : i32
    return %c0_i32, %c0_i32_0 : i32, i32
  }
  func.func @transform_13(%arg0: i32) -> (i32, i32) {
    %c0_i32 = arith.constant 0 : i32
    %c0_i32_0 = arith.constant 0 : i32
    %c0_i32_1 = arith.constant 0 : i32
    return %c0_i32, %c0_i32_0 : i32, i32
  }
  func.func @transform_14(%arg0: i32) -> (i32, i32) {
    %c0_i32 = arith.constant 0 : i32
    %c0_i32_0 = arith.constant 0 : i32
    %c0_i32_1 = arith.constant 0 : i32
    return %c0_i32, %c0_i32_0 : i32, i32
  }
  func.func @transform_15(%arg0: i32) -> (i32, i32) {
    %c0_i32 = arith.constant 0 : i32
    %c0_i32_0 = arith.constant 0 : i32
    %c0_i32_1 = arith.constant 0 : i32
    return %c0_i32, %c0_i32_0 : i32, i32
  }
  func.func @transform_16(%arg0: i32) -> (i32, i32) {
    %c0_i32 = arith.constant 0 : i32
    %c0_i32_0 = arith.constant 0 : i32
    %c0_i32_1 = arith.constant 0 : i32
    return %c0_i32, %c0_i32_0 : i32, i32
  }
  func.func @transform_17(%arg0: i32) -> (i32, i32) {
    %c0_i32 = arith.constant 0 : i32
    %c0_i32_0 = arith.constant 0 : i32
    %c0_i32_1 = arith.constant 0 : i32
    return %c0_i32, %c0_i32_0 : i32, i32
  }
  func.func @transform_18(%arg0: i32) -> (i32, i32) {
    %c0_i32 = arith.constant 0 : i32
    %c0_i32_0 = arith.constant 0 : i32
    %c0_i32_1 = arith.constant 0 : i32
    return %c0_i32, %c0_i32_0 : i32, i32
  }
  func.func @transform_19(%arg0: i32) -> (i32, i32, i32) {
    %c0_i32 = arith.constant 0 : i32
    %c0_i32_0 = arith.constant 0 : i32
    %c0_i32_1 = arith.constant 0 : i32
    return %arg0, %c0_i32, %c0_i32_0 : i32, i32, i32
  }
}

</mosaic_0001>

<bundles_post_ra>
// kernel: tpu_custom_call.1
= control target key start
LH: loop header
LB: loop body
LE: loop exit
PB: predicated region body
PF: predicated region fallthrough
CT: control target
= control target key end

     0   :  { %s2991_s0 = inlined_call_operand.vmem [shape: f32[2,16,32], index: 0, kind: input, shape index: {}]   ;;  %s2992_s1 = inlined_call_operand.vmem [shape: f32[2,24,32], index: 1, kind: input, shape index: {}]   ;;  %s2993_s2 = inlined_call_operand.hbm [shape: f32[32,32], index: 2, kind: input, shape index: {}]   ;;  %s2994_s3 = inlined_call_operand.hbm [shape: f32[32,32], index: 3, kind: input, shape index: {}]   ;;  %s2995_s4 = inlined_call_operand.vmem [shape: f32[1,32], index: 4, kind: input, shape index: {}]   ;;  %s2996_s5 = inlined_call_operand.vmem [shape: f32[32,32], index: 5, kind: input, shape index: {}]   ;;  %s2997_s6 = inlined_call_operand.vmem [shape: f32[1,32], index: 6, kind: input, shape index: {}]   ;;  %s2998_s7 = inlined_call_operand.hbm [shape: f32[32,32], index: 7, kind: input, shape index: {}]   ;;  %s2999_s8 = inlined_call_operand.vmem [shape: f32[1,32], index: 8, kind: input, shape index: {}]   ;;  %s3000_s9 = inlined_call_operand.hbm [shape: f32[32,32], index: 9, kind: input, shape index: {}]   ;;  %s3001_s10 = inlined_call_operand.vmem [shape: f32[1,32], index: 10, kind: input, shape index: {}]   ;;  %s3002_s11 = inlined_call_operand.vmem [shape: f32[1,32], index: 11, kind: input, shape index: {}]   ;;  %s3003_s12 = inlined_call_operand.vmem [shape: f32[1,32], index: 12, kind: input, shape index: {}]   ;;  %s3004_s13 = inlined_call_operand.hbm [shape: f32[32,64], index: 13, kind: input, shape index: {}]   ;;  %s3005_s14 = inlined_call_operand.vmem [shape: f32[1,64], index: 14, kind: input, shape index: {}]   ;;  %s3006_s15 = inlined_call_operand.vmem [shape: f32[64,32], index: 15, kind: input, shape index: {}]   ;;  %s3007_s16 = inlined_call_operand.vmem [shape: f32[1,32], index: 16, kind: input, shape index: {}]   ;;  %s3008_s17 = inlined_call_operand.vmem [shape: f32[1,32], index: 17, kind: input, shape index: {}]   ;;  %s3009_s18 = inlined_call_operand.vmem [shape: f32[1,32], index: 18, kind: input, shape index: {}]   ;;  %s3010_s19 = inlined_call_operand.hbm [shape: f32[2,16,32], index: 19, kind: output, shape index: {}]  }
   0x1   :  { %3027 = sst [smem:[#allocation24_spill]] %s2991_s0 }
   0x2   :  { %3028 = sst [smem:[#allocation25_spill]] %s2992_s1 }
   0x3   :  { %3029 = sst [smem:[#allocation26_spill]] %s2993_s2 }
   0x4   :  { %3030 = sst [smem:[#allocation27_spill]] %s2994_s3 }
   0x5   :  { %3031 = sst [smem:[#allocation28_spill]] %s3000_s9 }
   0x6   :  { %3032 = sst [smem:[#allocation29_spill]] %s3007_s16 }
   0x7   :  { %3033 = sst [smem:[#allocation30_spill]] %s3008_s17 }
   0x8   :  { %3034 = sst [smem:[#allocation31_spill]] %s3009_s18 }
   0x9   :  { %3035 = sst [smem:[#allocation32_spill]] %s3010_s19 }
   0xa   :  { %24 = vsyncpa [#allocation3], 0 }
   0xb   :  { %25 = vsyncpa [#allocation6], 0 }
   0xc   :  { %26 = vsyncpa [#allocation9], 0 }
   0xd   :  { %27 = vsyncpa [#allocation4], 0 }
   0xe   :  { %29 = vsyncpa [#allocation4 + $0x1], 0  ;;  %s2601_s0 = smov 0   ;;  %s2603_s30 = smov 0  }
   0xf   :  { %s2605_s20 = smov 0   ;;  %s2607_s21 = smov 0  }
  0x10 LB: > { %3036 = sst [smem:[#allocation16_spill]] %s2474_s0  ;;  %s2622_s1 = sadd.s32 4294967295, %s2486_s21   ;;  %s2486_s21 = sphi %s2607_s21, %s3073_s21   ;;  %s2482_s20 = sphi %s2605_s20, %s3076_s20   ;;  %s2478_s30 = sphi %s2603_s30, %s3075_s30   ;;  %s2474_s0 = sphi %s2601_s0, %s3074_s0  }
  0x11   : > { %3037 = sst [smem:[#allocation17_spill]] %s2478_s30  ;;  %s1842_s22 = sadd.s32 4294967294, %s2486_s21  }
  0x12   : > { %3038 = sst [smem:[#allocation18_spill]] %s2482_s20  ;;  %s2626_s2 = sadd.s32 1, %s2486_s21  }
  0x13   : > { %3039 = sst [smem:[#allocation19_spill]] %s2486_s21  ;;  %s451_s23 = sadd.s32 1, %s2482_s20 }
  0x14   : > { %3040 = sst [smem:[#allocation20_spill]] %s2626_s2  ;;  %s448_s24 = ssub.s32 %s2486_s21, %s2626_s2 }
  0x15   : > { %p461_p0 = scmp.ne.s32.totalorder %s2482_s20, %s2478_s30  ;;  %p449_p1 = scmp.eq.s32.totalorder %s448_s24, 0 }
  0x16   : > { %p462_p2 = scmp.eq.s32.totalorder %s2622_s1, 1  ;;  %p467_p3 = scmp.ne.s32.totalorder %s2478_s30, %s2474_s0 }
  0x17   : > { %p468_p4 = scmp.eq.s32.totalorder %s1842_s22, 1  ;;  %p1843_p7 = scmp.ge.s32.totalorder %s2486_s21, 1 }
  0x18   : > { %s2637_s25 = scalar_select %p449_p1, %s2482_s20, %s451_s23  }
  0x19   : > { %p2639_p5 = por %p462_p2, %p461_p0  ;;  %p2643_p6 = por %p468_p4, %p467_p3 }
  0x1a   : > { %3041 = sst [smem:[#allocation21_spill]] %s2637_s25  ;;  %p475_p8 = scmp.lt.s32.totalorder %s2486_s21, 3 }
  0x1b   : > { %s3042_s3 = scalar_select %p2639_p5, 1, 0 }
  0x1c   : > { %s3044_s26 = scalar_select %p2643_p6, 1, 0 }
  0x1d   : > { %3043 = sst [smem:[#allocation22_spill]] %s3042_s3  ;;  %p3022_p9 = scmp.eq.s32.totalorder %s2622_s1, 0 }
  0x1e   : > { %3045 = sst [smem:[#allocation23_spill]] %s3044_s26  ;;  %p2650_p10 = pnand %p1843_p7, %p475_p8 }
  0x1f   : > { %s2488_s28 = smov [#allocation5]   ;;  %s2489_s23 = smov [#allocation8]  }
  0x20   : > { %s3046_s27 = scalar_select %p2650_p10, 1, 0 }
  0x21   : > { %p2175_p11 = pneg %p2650_p10  ;;  %s500_s29 = sshll.u32 %s2488_s28, 4  ;;  %s2656_s29 = int_to_ptr.vmem [resolvable:$true] %s500_s29 }
  0x22   : > { %s538_s24 = sshll.u32 %s2489_s23, 4  ;;  %s2490_s25 = smov [#allocation2]   ;;  %s2664_s24 = int_to_ptr.vmem [resolvable:$true] %s538_s24 }
  0x23   : > { %p2660_p12 = pnand %p3022_p9, %p2175_p11  ;;  %s2666_s20 = sshll.u32 %s2490_s25, 4  ;;  %s488_s20 = int_to_ptr.vmem [resolvable:$true] %s2666_s20 }
  0x24   : > { %s3048_s0 = sld [smem:[#allocation27_spill]] }
  0x25   : > { %p2676_p0 = pneg %p2660_p12 }
  0x2a   : > { %s3049_s19 = smov %s3048_s0  ;;  %s2272_s21 = scalar_lea.hbm %s3048_s0, 512 }
  0x2b   : > { %p2273_p13 = scmp.ne.s32.totalorder %s3049_s19, %s2272_s21  ;;  %p2279_p3 = scmp.lt.u32.totalorder %s2272_s21, %s3049_s19 }
  0x2d   : > { %p2275_p1 = pnand %p2676_p0, %p2273_p13 }
  0x2f   : > { %p2276_p2 = pneg %p2275_p1 }
  0x31   : > { %p2281_p4 = pnand %p2279_p3, %p2276_p2 }
  0x33   : > { %2284 = shalt.err (!%p2281_p4)
}
  0x34   : > { %s2285_s0 = scalar_lea.vmem %s2656_s29, 512  ;;  %p2293_p9 = scmp.lt.s32.totalorder %s2656_s29, %s2656_s29 }
  0x35   : > { %p2286_p7 = scmp.ne.s32.totalorder %s2656_s29, %s2285_s0  ;;  %p2294_p6 = scmp.lt.s32.totalorder %s2285_s0, %s2285_s0 }
  0x37   : > { %p2288_p8 = pnand %p2286_p7, %p2676_p0  ;;  %p2295_p13 = por %p2294_p6, %p2293_p9 }
  0x39   : > { %p2289_p11 = pneg %p2288_p8 }
  0x3b   : > { %p2296_p1 = pnand %p2295_p13, %p2289_p11 }
  0x3d   : > { %2299 = shalt.err (!%p2296_p1)
}
  0x3e   : > { %s2491_s2 = smov 128   ;;  %s2492_s21 = smov 8  }
  0x3f   : > { %2181 = dma.hbm_to_vmem [thread:$0]  (!%p2660_p12), %s3049_s19, 512, %s2656_s29, [#allocation6], %s2491_s2, %s2491_s2, %s2492_s21  }
  0x40   : > { %s3051_s9 = sld [smem:[#allocation28_spill]] }
  0x46   : > { %s2300_s25 = scalar_lea.hbm %s3051_s9, 512 }
  0x47   : > { %p2301_p6 = scmp.ne.s32.totalorder %s3051_s9, %s2300_s25  ;;  %p2307_p3 = scmp.lt.u32.totalorder %s2300_s25, %s3051_s9 }
  0x49   : > { %p2303_p9 = pnand %p2301_p6, %p2676_p0 }
  0x4b   : > { %p2304_p2 = pneg %p2303_p9 }
  0x4d   : > { %p2309_p4 = pnand %p2307_p3, %p2304_p2 }
  0x4f   : > { %2312 = shalt.err (!%p2309_p4)
}
  0x50   : > { %s2313_s29 = scalar_lea.vmem %s2664_s24, 512  ;;  %p2321_p13 = scmp.lt.s32.totalorder %s2664_s24, %s2664_s24 }
  0x51   : > { %p2314_p7 = scmp.ne.s32.totalorder %s2664_s24, %s2313_s29  ;;  %p2322_p1 = scmp.lt.s32.totalorder %s2313_s29, %s2313_s29 }
  0x53   : > { %p2316_p8 = pnand %p2314_p7, %p2676_p0  ;;  %p2323_p6 = por %p2322_p1, %p2321_p13 }
  0x55   : > { %p2317_p11 = pneg %p2316_p8 }
  0x57   : > { %p2324_p9 = pnand %p2323_p6, %p2317_p11 }
  0x59   : > { %2327 = shalt.err (!%p2324_p9)
}
  0x5a   : > { %2187 = dma.hbm_to_vmem [thread:$0]  (!%p2660_p12), %s3051_s9, 512, %s2664_s24, [#allocation9], %s2491_s2, %s2491_s2, %s2492_s21  }
  0x5b   : > { %s3052_s26 = sld [smem:[#allocation26_spill]] }
  0x61   : > { %s2328_s28 = scalar_lea.hbm %s3052_s26, 512 }
  0x62   : > { %p2329_p2 = scmp.ne.s32.totalorder %s3052_s26, %s2328_s28  ;;  %p2335_p7 = scmp.lt.u32.totalorder %s2328_s28, %s3052_s26 }
  0x64   : > { %p2331_p3 = pnand %p2329_p2, %p2676_p0 }
  0x66   : > { %p2332_p4 = pneg %p2331_p3 }
  0x68   : > { %p2337_p8 = pnand %p2335_p7, %p2332_p4 }
  0x6a   : > { %2340 = shalt.err (!%p2337_p8)
}
  0x6b   : > { %s2341_s16 = scalar_lea.vmem %s488_s20, 512  ;;  %p2349_p6 = scmp.lt.s32.totalorder %s488_s20, %s488_s20 }
  0x6c   : > { %p2342_p11 = scmp.ne.s32.totalorder %s488_s20, %s2341_s16  ;;  %p2350_p9 = scmp.lt.s32.totalorder %s2341_s16, %s2341_s16 }
  0x6e   : > { %p2344_p13 = pnand %p2342_p11, %p2676_p0  ;;  %p2351_p5 = por %p2350_p9, %p2349_p6 }
  0x70   : > { %p2345_p1 = pneg %p2344_p13 }
  0x72   : > { %p2352_p10 = pnand %p2351_p5, %p2345_p1 }
  0x74   : > { %2355 = shalt.err (!%p2352_p10)
}
  0x75   : > { %2178 = dma.hbm_to_vmem [thread:$0]  (!%p2660_p12), %s3052_s26, 512, %s488_s20, [#allocation3], %s2491_s2, %s2491_s2, %s2492_s21  }
  0x76   : > { %s2493_s30 = smov [#allocation7]   ;;  %s2494_s28 = smov [#allocation10]  }
  0x77   : > { %s522_s3 = sshll.u32 %s2493_s30, 4  ;;  %s560_s23 = sshll.u32 %s2494_s28, 4  ;;  %s523_s3 = int_to_ptr.vmem [resolvable:$true] %s522_s3  ;;  %s561_s23 = int_to_ptr.vmem [resolvable:$true] %s560_s23 }
  0x78   : > { %s2356_s29 = scalar_lea.hbm %s2998_s7, 512 }
  0x79   : > { %p2357_p5 = scmp.ne.s32.totalorder %s2998_s7, %s2356_s29  ;;  %p2363_p3 = scmp.lt.u32.totalorder %s2356_s29, %s2998_s7 }
  0x7b   : > { %p2359_p10 = pnand %p2357_p5, %p2676_p0 }
  0x7d   : > { %p2360_p2 = pneg %p2359_p10 }
  0x7f   : > { %p2365_p4 = pnand %p2363_p3, %p2360_p2 }
  0x81   : > { %2368 = shalt.err (!%p2365_p4)
}
  0x82   : > { %s2369_s20 = scalar_lea.vmem %s523_s3, 512  ;;  %p2377_p13 = scmp.lt.s32.totalorder %s523_s3, %s523_s3 }
  0x83   : > { %p2370_p7 = scmp.ne.s32.totalorder %s523_s3, %s2369_s20  ;;  %p2378_p1 = scmp.lt.s32.totalorder %s2369_s20, %s2369_s20 }
  0x85   : > { %p2372_p8 = pnand %p2370_p7, %p2676_p0  ;;  %p2379_p6 = por %p2378_p1, %p2377_p13 }
  0x87   : > { %p2373_p11 = pneg %p2372_p8 }
  0x89   : > { %p2380_p9 = pnand %p2379_p6, %p2373_p11 }
  0x8b   : > { %2383 = shalt.err (!%p2380_p9)
}
  0x8c   : > { %2184 = dma.hbm_to_vmem [thread:$0]  (!%p2660_p12), %s2998_s7, 512, %s523_s3, [#allocation6], %s2491_s2, %s2491_s2, %s2492_s21  }
  0x8d   : > { %s2384_s28 = scalar_lea.hbm %s3004_s13, 512 }
  0x8e   : > { %p2385_p5 = scmp.ne.s32.totalorder %s3004_s13, %s2384_s28  ;;  %p2391_p3 = scmp.lt.u32.totalorder %s2384_s28, %s3004_s13 }
  0x90   : > { %p2387_p10 = pnand %p2385_p5, %p2676_p0 }
  0x92   : > { %p2388_p2 = pneg %p2387_p10 }
  0x94   : > { %p2393_p4 = pnand %p2391_p3, %p2388_p2 }
  0x96   : > { %2396 = shalt.err (!%p2393_p4)
}
  0x97   : > { %s2397_s24 = scalar_lea.vmem %s561_s23, 512  ;;  %p2405_p13 = scmp.lt.s32.totalorder %s561_s23, %s561_s23 }
  0x98   : > { %p2398_p7 = scmp.ne.s32.totalorder %s561_s23, %s2397_s24  ;;  %p2406_p1 = scmp.lt.s32.totalorder %s2397_s24, %s2397_s24 }
  0x9a   : > { %p2400_p8 = pnand %p2398_p7, %p2676_p0  ;;  %p2407_p6 = por %p2406_p1, %p2405_p13 }
  0x9c   : > { %p2401_p11 = pneg %p2400_p8 }
  0x9e   : > { %p2408_p9 = pnand %p2407_p6, %p2401_p11 }
  0xa0   : > { %2411 = shalt.err (!%p2408_p9)
}
  0xa1   : > { %2190 = dma.hbm_to_vmem [thread:$0]  (!%p2660_p12), %s3004_s13, 512, %s561_s23, [#allocation9], %s2491_s2, %s2491_s2, %s2492_s21  }
  0xa2   : > { %p3053_p5 = scmp.ne.s32.totalorder %s3046_s27, 0 }
  0xa3   : > { %p3054_p0 = scmp.eq.s32.totalorder (!%p3053_p5), %s2622_s1, 0 }
  0xa4   : > { %607 = sbr.rel (%p3053_p5) target bundleno = 2305 (0x901), region = 96 }
  0xab   : > { %2457 = dma.done.wait (%p3054_p0), [#allocation3], 512   ;;  %p3055_p10 = pmov %p3054_p0 }
  0xac   : > { %p3056_p2 = pmov %p3054_p0 }
  0xad   : > { %2459 = vsyncadd (%p3055_p10), [#allocation3], 4294966784 }
  0xae   : > { %2461 = dma.done.wait (%p3056_p2), [#allocation6], 1024   ;;  %p3057_p3 = pmov %p3054_p0 }
  0xaf   : > { %p3058_p4 = pmov %p3054_p0 }
  0xb0   : > { %2463 = vsyncadd (%p3057_p3), [#allocation6], 4294966272 }
  0xb1   : > { %2465 = dma.done.wait (%p3058_p4), [#allocation9], 1024   ;;  %p3059_p12 = pmov %p3054_p0 }
  0xb2   : > { %p684_p7 = scmp.lt.s32.totalorder %s2622_s1, 1  ;;  %v2495_v0 = vmov 0.0|0.0   ;;  %vm2496_vm0 = vmmov 0   ;;  %v2497_v1 = vmov 0.0   ;;  %s3060_s21 = sld [smem:[#allocation24_spill]]  ;;  %vm714_vm1 = vcmask 261120  }
  0xb3   : > { %2467 = vsyncadd (%p3059_p12), [#allocation9], 4294966272  ;;  %2094 = vmatprep.subr.bf16.mxu0 %v2495_v0  ;;  %1996 = vmatprep.mubr.msk.f32.mxu0 %vm2496_vm0, %v2497_v1  ;;  %v703_v2 = vld [vmem:[#allocation5] sm:$0xff]  ;;  %v704_v3 = vld [vmem:[#allocation5 + $0x8] sm:$0xff]  ;;  %s3061_s20 = sld [smem:[#allocation25_spill]]  ;;  %vm1044_vm7 = vcmask 195584  }
  0xb4   : > { %s2806_s18 = scalar_select %p684_p7, %s2622_s1, 1  ;;  %v705_v4 = vld [vmem:[#allocation5 + $0x10] sm:$0xff]  ;;  %v2080_v5 = vpack.c.bf16 %v704_v3, %v703_v2  ;;  %v706_v6 = vld [vmem:[#allocation5 + $0x18] sm:$0xff]  ;;  %v796_v9 = vld [vmem:[%s2996_s5] sm:$0xff]  ;;  %vm1574_vm8 = vcmask 523264  }
  0xb5   : > { %v2084_v8 = vpack.c.bf16 %v706_v6, %v705_v4  ;;  %v896_v10 = vld [vmem:[#allocation7] sm:$0xff]  ;;  %v897_v11 = vld [vmem:[#allocation7 + $0x8] sm:$0xff]  ;;  %v898_v14 = vld [vmem:[#allocation7 + $0x10] sm:$0xff]  ;;  %s3062_s24 = sld [smem:[#allocation29_spill]]  ;;  %s3063_s3 = sld [smem:[#allocation17_spill]] }
  0xb6   : > { %s1897_s27 = sshll.u32 %s2806_s18, 4  ;;  %2081 = vmatprep.subr.bf16.mxu1 %v2080_v5  ;;  %v797_v12 = vld [vmem:[%s2996_s5 + $0x8] sm:$0xff]  ;;  %v2095_v13 = vpack.c.bf16 %v897_v11, %v896_v10  ;;  %v899_v15 = vld [vmem:[#allocation7 + $0x18] sm:$0xff]  ;;  %s2152_s28 = smul.u32 24, %s2806_s18  ;;  %v798_v19 = vld [vmem:[%s2996_s5 + $0x10] sm:$0xff] }
  0xb7   : > { %2083 = vmatpush3.bf16.msra.mxu1 %v2080_v5  ;;  %v2098_v16 = vpack.c.bf16 %v899_v15, %v898_v14  ;;  %v2089_v18 = vpack.c.bf16 %v797_v12, %v796_v9  ;;  %v799_v20 = vld [vmem:[%s2996_s5 + $0x18] sm:$0xff]  ;;  %v2848_v25 = vld [vmem:[#allocation2] sm:$0xff]  ;;  %v2850_v26 = vld [vmem:[#allocation2 + $0x8] sm:$0xff]  ;;  %s3064_s22 = sld [smem:[#allocation30_spill]]  ;;  %s3065_s9 = sld [smem:[#allocation31_spill]] }
  0xb8   : > { %s688_s23 = scalar_lea.vmem %s3060_s21, %s1897_s27  ;;  %2085 = vmatprep.subr.bf16.mxu1 %v2084_v8  ;;  %2096 = vmatpush3.bf16.msra.mxu0 %v2095_v13  ;;  %v2092_v21 = vpack.c.bf16 %v799_v20, %v798_v19  ;;  %v2104_v27 = vpack.c.bf16 %v2850_v26, %v2848_v25  ;;  %v2854_v28 = vld [vmem:[#allocation2 + $0x10] sm:$0xff]  ;;  %v2856_v29 = vld [vmem:[#allocation2 + $0x18] sm:$0xff]  ;;  %v1867_v33 = vld [vmem:[%s2999_s8] ss:$0 sm:$0xff]  ;;  %s3066_s19 = sld [smem:[#allocation22_spill]] }
  0xb9   : > { %v2813_v7 = vld [vmem:[%s688_s23] sm:$0xff]  ;;  %v2824_v17 = vld [vmem:[%s688_s23 + $0x8] sm:$0xff]  ;;  %2097 = vmatprep.subr.bf16.mxu0 %v2495_v0  ;;  %s693_s18 = scalar_lea.vmem %s3061_s20, %s2152_s28  ;;  %v2108_v30 = vpack.c.bf16 %v2856_v29, %v2854_v28  ;;  %s1898_s17 = sshll.u32 %s2622_s1, 8 }
  0xba   : > { %1968 = vmatprep.mubr.msk.f32.mxu1 %vm714_vm1, %v2813_v7  ;;  %v696_v22 = vld [vmem:[%s693_s18] sm:$0xff]  ;;  %v697_v23 = vld [vmem:[%s693_s18 + $0x8] sm:$0xff]  ;;  %v698_v24 = vld [vmem:[%s693_s18 + $0x10] sm:$0xff]  ;;  %s3067_s29 = sld [smem:[#allocation32_spill]] }
  0xbb   : > { %2087 = vmatpush3.bf16.msra.mxu1 %v2084_v8  ;;  %v1863_v36 = vld [vmem:[%s2997_s6] ss:$0 sm:$0xff]  ;;  %s681_s20 = sand.u32 1, %s3063_s3   ;;  %s2498_s3 = smov [#allocation11]  }
  0xbc   : > { %2088 = vmatprep.subr.bf16.mxu1 %v2495_v0  ;;  %2099 = vmatpush3.bf16.msra.mxu0 %v2098_v16  ;;  %v1860_v57 = vld [vmem:[%s2995_s4] ss:$0 sm:$0xff]  ;;  %s1856_s2 = sshll.u32 %s681_s20, 4  ;;  %s2416_s18 = sshll.u32 %s2498_s3, 4  ;;  %s2417_s18 = int_to_ptr.vmem [resolvable:$false] %s2416_s18 }
  0xbd   : > { %2105 = vmatprep.subr.bf16.mxu0 %v2104_v27  ;;  %s683_s30 = scalar_lea.vmem [#allocation11], %s1856_s2  ;;  %s2418_s27 = scalar_lea.vmem %s2417_s18, 512 }
  0xbe   : > { %1969 = vmatmul.mubr.msk.f32.vlgmr.msra.gmra.mrb[0].mxu1 %vm714_vm1, %v2824_v17  ;;  %s1718_s28 = sshll.u32 %s683_s30, 4  ;;  %p3068_p11 = scmp.ne.s32.totalorder %s3066_s19, 0  ;;  %s2947_s28 = int_to_ptr.vmem [resolvable:$true] %s1718_s28 }
  0xbf   : > { %2090 = vmatpush3.bf16.msra.mxu1 %v2089_v18  ;;  %1979 = vmatprep.mubr.msk.f32.mxu1 %vm2496_vm0, %v2497_v1  ;;  %s2412_s1 = scalar_lea.vmem %s2947_s28, 256  ;;  %p2419_p6 = scmp.lt.s32.totalorder %s2947_s28, %s2417_s18 }
  0xc0   : > { %2091 = vmatprep.subr.bf16.mxu1 %v2495_v0  ;;  %1997 = vmatmul.mubr.msk.f32.vlgmr.msra.gmra.mrb[0].mxu0 %vm714_vm1, %v696_v22  ;;  %s2945_s16 = scalar_lea.hbm %s3067_s29, %s1898_s17  ;;  %p2413_p8 = scmp.ne.s32.totalorder %s2947_s28, %s2412_s1 }
  0xc1   : > { %1999 = vmatprep.mubr.msk.f32.mxu0 %vm2496_vm0, %v2497_v1  ;;  %2107 = vmatpush3.bf16.msra.mxu0 %v2104_v27  ;;  %p2420_p9 = scmp.lt.s32.totalorder %s2418_s27, %s2412_s1 }
  0xc2   : > { %2109 = vmatprep.subr.bf16.mxu0 %v2108_v30  ;;  %p2414_p13 = pnand %p2413_p8, %p3068_p11 }
  0xc3   : > { %2093 = vmatpush3.bf16.msra.mxu1 %v2092_v21  ;;  %p2421_p5 = por %p2420_p9, %p2419_p6 }
  0xc4   : > { %2000 = vmatmul.mubr.msk.f32.gmra.mrb[2].mxu0 %vm714_vm1, %v697_v23  ;;  %p2415_p1 = pneg %p2414_p13 }
  0xc5   : > { %2002 = vmatprep.mubr.msk.f32.mxu0 %vm2496_vm0, %v2497_v1  ;;  %2111 = vmatpush3.bf16.msra.mxu0 %v2108_v30 }
  0xc6   : > { %1980 = vmatmul.mubr.msk.f32.vlgmr.msra.gmra.mrb[2].mxu1 %vm714_vm1, %v696_v22  ;;  %p2422_p0 = pnand %p2421_p5, %p2415_p1 }
  0xc7   : > { %1982 = vmatprep.mubr.msk.f32.mxu1 %vm2496_vm0, %v2497_v1 }
  0xc8   : > { %2003 = vmatmul.mubr.msk.f32.gmra.mrb[4].mxu0 %vm714_vm1, %v698_v24 }
  0xca   : > { %1983 = vmatmul.mubr.msk.f32.gmra.mrb[4].mxu1 %vm714_vm1, %v697_v23 }
  0xcb   : > { %1985 = vmatprep.mubr.msk.f32.mxu1 %vm2496_vm0, %v2497_v1 }
  0xce   : > { %1986 = vmatmul.mubr.msk.f32.gmra.mrb[6].mxu1 %vm714_vm1, %v698_v24 }
 0x191   : > { %v1970_v31 = vpop.f32.mrb[0].mxu1 }
 0x192   : > { %v787_v32 = vpop.f32.mrb[1].mxu1  ;;  %v793_v61 = vadd.f32 %v1970_v31, %v1860_v57 }
 0x193   : > { %v973_v34 = vpop.f32.mrb[0].mxu0  ;;  %v788_v62 = vadd.f32 %v1860_v57, %v787_v32 }
 0x194   : > { %v1998_v35 = vpop.f32.mrb[1].mxu0  ;;  %v974_v37 = vadd.f32 %v1867_v33, %v973_v34  ;;  %v993_v2 = vmul.f32 1.442695, %v793_v61  ;;  %v990_v21 = vadd.f32 1.0, %v793_v61  ;;  %vm988_vm5 = vcmp.gt.f32.partialorder %v793_v61, 0.0 }
 0x195   : > { %v991_v5 = vmul.f32 1.442695, %v788_v62  ;;  %v989_v22 = vadd.f32 1.0, %v788_v62  ;;  %vm987_vm6 = vcmp.gt.f32.partialorder %v788_v62, 0.0 }
 0x197   : > { %v978_v38 = vpop.f32.mrb[2].mxu0 }
 0x198   : > { %v979_v40 = vadd.f32 %v1867_v33, %v978_v38  ;;  %v2001_v41 = vpop.f32.mrb[3].mxu0 }
 0x199   : > { %v882_v39 = vpop.f32.mrb[2].mxu1 }
 0x19a   : > { %v883_v42 = vadd.f32 %v1863_v36, %v882_v39  ;;  %v1981_v43 = vpop.f32.mrb[3].mxu1  ;;  %v2100_v44 = vpack.c.bf16 %v979_v40, %v974_v37  ;;  %v1328_v37 = vld [vmem:[#allocation8 + $0x8] sm:$0xff] }
 0x19b   : > { %v983_v46 = vpop.f32.mrb[4].mxu0 }
 0x19c   : > { %v1003_v45 = vmul.f32 1.442695, %v883_v42  ;;  %2101 = vmatprep.subr.bf16.mxu1 %v2100_v44  ;;  %v984_v48 = vadd.f32 %v1867_v33, %v983_v46  ;;  %v2004_v49 = vpop.f32.mrb[5].mxu0  ;;  %v1000_v58 = vadd.f32 1.0, %v883_v42  ;;  %vm997_vm2 = vcmp.gt.f32.partialorder %v883_v42, 0.0 }
 0x19d   : > { %v887_v47 = vpop.f32.mrb[4].mxu1  ;;  %2103 = vmatpush3.bf16.msra.mxu1 %v2100_v44 }
 0x19e   : > { %2250 = vpow2.f32 %v1003_v45  ;;  %v888_v50 = vadd.f32 %v1863_v36, %v887_v47  ;;  %v1984_v51 = vpop.f32.mrb[5].mxu1  ;;  %2009 = vmatprep.subr.mxu1 %v984_v48 }
 0x19f   : > { %v1329_v51 = vld [vmem:[#allocation8 + $0x10] sm:$0xff] }
 0x1a0   : > { %v1005_v52 = vmul.f32 1.442695, %v888_v50  ;;  %v1001_v63 = vadd.f32 1.0, %v888_v50  ;;  %vm998_vm3 = vcmp.gt.f32.partialorder %v888_v50, 0.0 }
 0x1a1   : > { %v892_v53 = vpop.f32.mrb[6].mxu1  ;;  %2010 = vmatpush3.msra.mxu1 %v984_v48 }
 0x1a2   : > { %2252 = vpow2.f32 %v1005_v52  ;;  %v893_v54 = vadd.f32 %v1863_v36, %v892_v53  ;;  %v1987_v55 = vpop.f32.mrb[7].mxu1  ;;  %v1327_v36 = vld [vmem:[#allocation8] sm:$0xff]  ;;  %v1330_v52 = vld [vmem:[#allocation8 + $0x18] sm:$0xff] }
 0x1a3   : > { %v2120_v38 = vpack.c.bf16 %v1328_v37, %v1327_v36 }
 0x1a4   : > { %v1007_v56 = vmul.f32 1.442695, %v893_v54  ;;  %v1002_v8 = vadd.f32 1.0, %v893_v54  ;;  %vm999_vm4 = vcmp.gt.f32.partialorder %v893_v54, 0.0 }
 0x1a5   : > { %2121 = vmatprep.subr.bf16.mxu0 %v2120_v38 }
 0x1a6   : > { %2254 = vpow2.f32 %v1007_v56 }
 0x1a7   : > { %2256 = vpow2.f32 %v993_v2 }
 0x1a8   : > { %v2251_v59 = vpop.eup %2250  ;;  %2258 = vpow2.f32 %v991_v5 }
 0x1a9   : > { %v1009_v60 = vsel %vm997_vm2, %v1000_v58, %v2251_v59  ;;  %v1879_v58 = vld [vmem:[%s3001_s10] ss:$0 sm:$0xff] }
 0x1aa   : > { %1012 = vxpose.xlu0.b32.start [1/3] (short) (narrow) %v1009_v60, 32  ;;  %v1146_v3 = vsel %vm714_vm1, %v1009_v60, 0.0 }
 0x1ac   : > { %v2253_v0 = vpop.eup %2252 }
 0x1ad   : > { %v1010_v1 = vsel %vm998_vm3, %v1001_v63, %v2253_v0 }
 0x1ae   : > { %1013 = vxpose.xlu0.b32.cont [2/3] (short) (narrow) %v1010_v1, 32  ;;  %v1147_v4 = vsel %vm714_vm1, %v1010_v1, 0.0 }
 0x1af   : > { %v1148_v6 = vadd.f32 %v1147_v4, %v1146_v3 }
 0x1b0   : > { %v2255_v9 = vpop.eup %2254 }
 0x1b1   : > { %v1011_v10 = vsel %vm999_vm4, %v1002_v8, %v2255_v9  ;;  %v2257_v18 = vpop.eup %2256 }
 0x1b2   : > { %1014 = vxpose.xlu0.b32.end [3/3] (short) (narrow) %v1011_v10, 32  ;;  %v1149_v11 = vsel %vm714_vm1, %v1011_v10, 0.0  ;;  %v2259_v19 = vpop.eup %2258  ;;  %v996_v24 = vsel %vm988_vm5, %v990_v21, %v2257_v18  ;;  %v1561_v21 = vld [vmem:[%s3006_s15 + $0x10] sm:$0xff] }
 0x1b3   : > { %v1150_v12 = vadd.f32 %v1149_v11, %v1148_v6  ;;  %v995_v27 = vsel %vm987_vm6, %v989_v22, %v2259_v19  ;;  %v1559_v19 = vld [vmem:[%s3006_s15] sm:$0xff] }
 0x1b5   : > { %v1151_v13 = vrot.slane %v1150_v12, 4 }
 0x1b7   : > { %v1152_v14 = vadd.f32 %v1151_v13, %v1150_v12  ;;  %v1465_v13 = vld [vmem:[#allocation10] sm:$0xff] }
 0x1b9   : > { %v1153_v15 = vrot.slane %v1152_v14, 2 }
 0x1bb   : > { %v1154_v16 = vadd.f32 %v1153_v15, %v1152_v14  ;;  %v1467_v15 = vld [vmem:[#allocation10 + $0x10] sm:$0xff] }
 0x1bd   : > { %v1155_v20 = vrot.slane %v1154_v16, 1 }
 0x1bf   : > { %v1156_v23 = vadd.f32 %v1155_v20, %v1154_v16  ;;  %v1468_v16 = vld [vmem:[#allocation10 + $0x18] sm:$0xff]  ;;  %v1560_v20 = vld [vmem:[%s3006_s15 + $0x8] sm:$0xff] }
 0x1c0   : > { %v2132_v18 = vpack.c.bf16 %v1468_v16, %v1467_v15  ;;  %v2136_v22 = vpack.c.bf16 %v1560_v20, %v1559_v19  ;;  %v1890_v15 = vld [vmem:[%s3064_s22] ss:$0 sm:$0xff] }
 0x1c1   : > { %v1158_v30 = vmul.f32 %v1156_v23, %v996_v24  ;;  %v1157_v31 = vmul.f32 %v1156_v23, %v995_v27  ;;  %v1562_v23 = vld [vmem:[%s3006_s15 + $0x18] sm:$0xff] }
 0x1c3   : > { %2025 = vmatprep.mubr.msk.f32.mxu0 %vm714_vm1, %v1157_v31 }
 0x1c4   : > { %2026 = vmatmul.mubr.msk.f32.vlgmr.msra.gmra.mrb[6].mxu0 %vm714_vm1, %v1158_v30  ;;  %v1564_v30 = vld [vmem:[%s3006_s15 + $0x28] sm:$0xff] }
 0x1c5   : > { %2123 = vmatpush3.bf16.msra.mxu0 %v2120_v38 }
 0x22a   : > { %v1028_v32 = vpop.trf.xlu0 }
 0x22b   : > { %2011 = vmatprep.mubr.msk.f32.mxu1 %vm1044_vm7, %v1028_v32 }
 0x22e   : > { %v1029_v33 = vpop.trf.xlu0 }
 0x22f   : > { %2012 = vmatmul.mubr.msk.f32.vlgmr.msra.gmra.mrb[8].mxu1 %vm1044_vm7, %v1029_v33 }
 0x232   : > { %v1030_v34 = vpop.trf.xlu0 }
 0x233   : > { %2014 = vmatprep.mubr.msk.f32.mxu1 %vm1044_vm7, %v1030_v34 }
 0x236   : > { %v1031_v35 = vpop.trf.xlu0 }
 0x237   : > { %2015 = vmatmul.mubr.msk.f32.gmra.mrb[10].mxu1 %vm1044_vm7, %v1031_v35 }
 0x238   : > { %2036 = vmatprep.mubr.msk.f32.mxu1 %vm714_vm1, %v995_v27  ;;  %v1563_v27 = vld [vmem:[%s3006_s15 + $0x20] sm:$0xff] }
 0x239   : > { %v2144_v31 = vpack.c.bf16 %v1564_v30, %v1563_v27 }
 0x297   : > { %v2027_v39 = vpop.f32.mrb[6].mxu0 }
 0x298   : > { %v1231_v40 = vpop.f32.mrb[7].mxu0 }
 0x299   : > { %v1232_v53 = vadd.f32 1e-06, %v1231_v40 }
 0x302   : > { %v2013_v41 = vpop.f32.mrb[8].mxu1 }
 0x303   : > { %v1143_v42 = vmul.f32 %v2013_v41, %v2850_v26  ;;  %v1123_v43 = vpop.f32.mrb[9].mxu1  ;;  %v2124_v26 = vpack.c.bf16 %v1330_v52, %v1329_v51  ;;  %v1883_v41 = vld [vmem:[%s3003_s12] ss:$0 sm:$0xff] }
 0x304   : > { %v1142_v44 = vmul.f32 %v1123_v43, %v2848_v25  ;;  %v1237_v25 = vadd.f32 1e-06, %v2027_v39  ;;  %v1882_v39 = vld [vmem:[%s3002_s11] ss:$0 sm:$0xff] }
 0x305   : > { %2125 = vmatprep.subr.bf16.mxu0 %v2124_v26  ;;  %v1884_v51 = vld [vmem:[%s3005_s14] ss:$0 sm:$0xff] }
 0x306   : > { %v2112_v45 = vpack.c.bf16 %v1143_v42, %v1142_v44  ;;  %2127 = vmatpush3.bf16.msra.mxu0 %v2124_v26  ;;  %2260 = vrcp.f32 %v1237_v25 }
 0x307   : > { %2262 = vrcp.f32 %v1232_v53  ;;  %2137 = vmatprep.subr.bf16.mxu0 %v2136_v22 }
 0x308   : > { %2113 = vmatprep.subr.bf16.mxu1 %v2112_v45 }
 0x309   : > { %2115 = vmatpush3.bf16.msra.mxu1 %v2112_v45 }
 0x30a   : > { %v2016_v46 = vpop.f32.mrb[10].mxu1 }
 0x30b   : > { %v1145_v47 = vmul.f32 %v2016_v46, %v2856_v29  ;;  %v1133_v48 = vpop.f32.mrb[11].mxu1 }
 0x30c   : > { %v1144_v49 = vmul.f32 %v1133_v48, %v2854_v28  ;;  %v1565_v48 = vld [vmem:[%s3006_s15 + $0x30] sm:$0xff] }
 0x30e   : > { %v2116_v50 = vpack.c.bf16 %v1145_v47, %v1144_v49  ;;  %v1566_v49 = vld [vmem:[%s3006_s15 + $0x38] sm:$0xff] }
 0x310   : > { %2117 = vmatprep.subr.bf16.mxu1 %v2116_v50  ;;  %v2261_v54 = vpop.eup %2260 }
 0x311   : > { %2119 = vmatpush3.bf16.msra.mxu1 %v2116_v50  ;;  %v2263_v29 = vpop.eup %2262  ;;  %v2148_v50 = vpack.c.bf16 %v1566_v49, %v1565_v48 }
 0x314   : > { %2037 = vmatmul.mubr.msk.f32.vlgmr.msra.gmra.mrb[12].mxu1 %vm714_vm1, %v996_v24  ;;  %v2140_v24 = vpack.c.bf16 %v1562_v23, %v1561_v21 }
 0x3e7   : > { %v2038_v55 = vpop.f32.mrb[12].mxu1 }
 0x3e8   : > { %v1326_v56 = vmul.f32 %v2261_v54, %v2038_v55  ;;  %v1316_v57 = vpop.f32.mrb[13].mxu1 }
 0x3e9   : > { %v1325_v28 = vmul.f32 %v2263_v29, %v1316_v57  ;;  %v1887_v29 = vld [vmem:[%s3062_s24] ss:$0 sm:$0xff]  ;;  %s2950_s24 = scalar_lea.sflag [#allocation4], %s681_s20 }
 0x3eb   : > { %2047 = vmatprep.mubr.msk.f32.mxu0 %vm714_vm1, %v1325_v28 }
 0x3ec   : > { %2048 = vmatmul.mubr.msk.f32.vlgmr.msra.gmra.mrb[8].mxu0 %vm714_vm1, %v1326_v56 }
 0x3ed   : > { %2139 = vmatpush3.bf16.msra.mxu0 %v2136_v22 }
 0x3ee   : > { %2141 = vmatprep.subr.bf16.mxu0 %v2140_v24 }
 0x3f1   : > { %2143 = vmatpush3.bf16.msra.mxu0 %v2140_v24 }
 0x3f2   : > { %2145 = vmatprep.subr.bf16.mxu0 %v2144_v31 }
 0x3f5   : > { %2147 = vmatpush3.bf16.msra.mxu0 %v2144_v31 }
 0x3f6   : > { %2149 = vmatprep.subr.bf16.mxu0 %v2148_v50 }
 0x3f9   : > { %2151 = vmatpush3.bf16.msra.mxu0 %v2148_v50 }
 0x4bf   : > { %v2049_v59 = vpop.f32.mrb[8].mxu0 }
 0x4c0   : > { %v1410_v60 = vpop.f32.mrb[9].mxu0  ;;  %v1416_v61 = vadd.f32 %v2049_v59, %v1879_v58 }
 0x4c1   : > { %v1411_v62 = vadd.f32 %v1879_v58, %v1410_v60 }
 0x4c2   : > { %v1420_v1 = vadd.f32 %v1416_v61, %v2824_v17  ;;  %v1466_v17 = vld [vmem:[#allocation10 + $0x8] sm:$0xff] }
 0x4c3   : > { %v1419_v63 = vadd.f32 %v1411_v62, %v2813_v7  ;;  %v2128_v14 = vpack.c.bf16 %v1466_v17, %v1465_v13 }
 0x4c4   : > { %v1426_v2 = vsel %vm714_vm1, %v1420_v1, 0.0 }
 0x4c5   : > { %v1423_v0 = vsel %vm714_vm1, %v1419_v63, 0.0  ;;  %2129 = vmatprep.subr.bf16.mxu1 %v2128_v14 }
 0x4c6   : > { %1424 = vadd.xlane.f32.xlu1 %v1423_v0  ;;  %2131 = vmatpush3.bf16.msra.mxu1 %v2128_v14 }
 0x4c7   : > { %2133 = vmatprep.subr.bf16.mxu1 %v2132_v18 }
 0x4ca   : > { %1427 = vadd.xlane.f32.xlu1 %v1426_v2  ;;  %2135 = vmatpush3.bf16.msra.mxu1 %v2132_v18  ;;  %v1891_v18 = vld [vmem:[%s3065_s9] ss:$0 sm:$0xff] }
 0x553   : > { %v1425_v3 = vpop.xlane.xlu1 %1424 }
 0x554   : > { %v1429_v4 = vmul.f32 0.03125, %v1425_v3 }
 0x556   : > { %v1431_v5 = vsub.f32 %v1419_v63, %v1429_v4 }
 0x557   : > { %v1428_v6 = vpop.xlane.xlu1 %1427 }
 0x558   : > { %v1430_v8 = vmul.f32 0.03125, %v1428_v6  ;;  %v1433_v9 = vmul.f32 %v1431_v5, %v1431_v5 }
 0x55a   : > { %v1432_v10 = vsub.f32 %v1420_v1, %v1430_v8  ;;  %v1435_v11 = vsel %vm714_vm1, %v1433_v9, 0.0 }
 0x55b   : > { %1436 = vadd.xlane.f32.xlu1 %v1435_v11 }
 0x55c   : > { %v1434_v12 = vmul.f32 %v1432_v10, %v1432_v10 }
 0x55e   : > { %v1438_v7 = vsel %vm714_vm1, %v1434_v12, 0.0 }
 0x55f   : > { %1439 = vadd.xlane.f32.xlu0 %v1438_v7 }
 0x5e8   : > { %v1437_v32 = vpop.xlane.xlu1 %1436 }
 0x5e9   : > { %v1441_v33 = vmul.f32 0.03125, %v1437_v32 }
 0x5eb   : > { %v1443_v34 = vadd.f32 1e-05, %v1441_v33 }
 0x5ec   : > { %v1440_v35 = vpop.xlane.xlu0 %1439 }
 0x5ed   : > { %2264 = vrsqrt.f32 %v1443_v34  ;;  %v1442_v36 = vmul.f32 0.03125, %v1440_v35 }
 0x5ef   : > { %v1444_v37 = vadd.f32 1e-05, %v1442_v36 }
 0x5f1   : > { %2266 = vrsqrt.f32 %v1444_v37 }
 0x5f7   : > { %v2265_v38 = vpop.eup %2264 }
 0x5f8   : > { %v1447_v40 = vmul.f32 %v2265_v38, %v1431_v5 }
 0x5fa   : > { %v1455_v42 = vmul.f32 %v1882_v39, %v1447_v40 }
 0x5fb   : > { %v2267_v43 = vpop.eup %2266 }
 0x5fc   : > { %v1448_v44 = vmul.f32 %v2267_v43, %v1432_v10  ;;  %v1463_v45 = vadd.f32 %v1883_v41, %v1455_v42 }
 0x5fe   : > { %v1456_v46 = vmul.f32 %v1882_v39, %v1448_v44  ;;  %2058 = vmatprep.mubr.msk.f32.mxu1 %vm714_vm1, %v1463_v45 }
 0x600   : > { %v1464_v47 = vadd.f32 %v1883_v41, %v1456_v46 }
 0x602   : > { %2059 = vmatmul.mubr.msk.f32.vlgmr.msra.gmra.mrb[14].mxu1 %vm714_vm1, %v1464_v47 }
 0x6d5   : > { %v2060_v52 = vpop.f32.mrb[14].mxu1 }
 0x6d6   : > { %v1554_v26 = vadd.f32 %v2060_v52, %v1884_v51  ;;  %v1548_v25 = vpop.f32.mrb[15].mxu1 }
 0x6d7   : > { %v1549_v53 = vadd.f32 %v1884_v51, %v1548_v25 }
 0x6d8   : > { %v1558_v55 = vmax.f32 %v1554_v26, 0.0 }
 0x6d9   : > { %v1557_v54 = vmax.f32 %v1549_v53, 0.0 }
 0x6db   : > { %2077 = vmatprep.mubr.msk.f32.mxu0 %vm1574_vm8, %v1557_v54 }
 0x6dc   : > { %2078 = vmatmul.mubr.msk.f32.vlgmr.msra.gmra.mrb[10].mxu0 %vm1574_vm8, %v1558_v55 }
 0x7af   : > { %v2079_v56 = vpop.f32.mrb[10].mxu0 }
 0x7b0   : > { %v1647_v57 = vpop.f32.mrb[11].mxu0  ;;  %v1653_v28 = vadd.f32 %v2079_v56, %v1887_v29 }
 0x7b1   : > { %v1648_v58 = vadd.f32 %v1887_v29, %v1647_v57 }
 0x7b2   : > { %v1657_v61 = vadd.f32 %v1653_v28, %v1464_v47 }
 0x7b3   : > { %v1656_v59 = vadd.f32 %v1648_v58, %v1463_v45 }
 0x7b4   : > { %v1663_v62 = vsel %vm714_vm1, %v1657_v61, 0.0 }
 0x7b5   : > { %v1660_v60 = vsel %vm714_vm1, %v1656_v59, 0.0 }
 0x7b6   : > { %1661 = vadd.xlane.f32.xlu1 %v1660_v60 }
 0x7ba   : > { %1664 = vadd.xlane.f32.xlu1 %v1663_v62 }
 0x843   : > { %v1662_v63 = vpop.xlane.xlu1 %1661 }
 0x844   : > { %v1666_v0 = vmul.f32 0.03125, %v1662_v63 }
 0x846   : > { %v1668_v1 = vsub.f32 %v1656_v59, %v1666_v0 }
 0x847   : > { %v1665_v2 = vpop.xlane.xlu1 %1664 }
 0x848   : > { %v1667_v3 = vmul.f32 0.03125, %v1665_v2  ;;  %v1670_v4 = vmul.f32 %v1668_v1, %v1668_v1 }
 0x84a   : > { %v1669_v5 = vsub.f32 %v1657_v61, %v1667_v3  ;;  %v1672_v6 = vsel %vm714_vm1, %v1670_v4, 0.0 }
 0x84b   : > { %1673 = vadd.xlane.f32.xlu1 %v1672_v6 }
 0x84c   : > { %v1671_v8 = vmul.f32 %v1669_v5, %v1669_v5 }
 0x84e   : > { %v1675_v9 = vsel %vm714_vm1, %v1671_v8, 0.0 }
 0x84f   : > { %1676 = vadd.xlane.f32.xlu1 %v1675_v9 }
 0x8d8   : > { %v1674_v10 = vpop.xlane.xlu1 %1673 }
 0x8d9   : > { %v1678_v11 = vmul.f32 0.03125, %v1674_v10 }
 0x8db   : > { %v1680_v12 = vadd.f32 1e-05, %v1678_v11 }
 0x8dc   : > { %v1677_v7 = vpop.xlane.xlu1 %1676 }
 0x8dd   : > { %2268 = vrsqrt.f32 %v1680_v12  ;;  %v1679_v13 = vmul.f32 0.03125, %v1677_v7 }
 0x8df   : > { %v1681_v17 = vadd.f32 1e-05, %v1679_v13 }
 0x8e1   : > { %2270 = vrsqrt.f32 %v1681_v17 }
 0x8e7   : > { %v2269_v14 = vpop.eup %2268 }
 0x8e8   : > { %v1684_v16 = vmul.f32 %v2269_v14, %v1668_v1 }
 0x8ea   : > { %v1692_v19 = vmul.f32 %v1890_v15, %v1684_v16 }
 0x8eb   : > { %v2271_v20 = vpop.eup %2270 }
 0x8ec   : > { %v1700_v21 = vadd.f32 %v1891_v18, %v1692_v19  ;;  %v1685_v22 = vmul.f32 %v2271_v20, %v1669_v5 }
 0x8ee   : > { %v1693_v23 = vmul.f32 %v1890_v15, %v1685_v22  ;;  %1702 = vst.msk [vmem:[%s683_s30] sm:$0xff] %vm714_vm1, %v1700_v21 }
 0x8f0   : > { %v1701_v24 = vadd.f32 %v1891_v18, %v1693_v23 }
 0x8f2   : > { %1703 = vst.msk [vmem:[%s683_s30 + $0x8] sm:$0xff] %vm714_vm1, %v1701_v24 }
 0x8f3   : > { %2425 = shalt.err (!%p2422_p0)
}
 0x8f4   : > { %s2426_s20 = scalar_lea.hbm %s2945_s16, 256  ;;  %s2430_s21 = scalar_lea.hbm %s3067_s29, 512 }
 0x8f5   : > { %p2427_p10 = scmp.ne.s32.totalorder %s2945_s16, %s2426_s20  ;;  %p2431_p4 = scmp.lt.u32.totalorder %s2945_s16, %s3067_s29 }
 0x8f6   : > { %p2432_p12 = scmp.lt.u32.totalorder %s2430_s21, %s2426_s20  ;;  %p2434_p8 = scmp.lt.u32.totalorder %s2426_s20, %s2945_s16 }
 0x8f7   : > { %p2428_p2 = pnand %p2427_p10, %p3068_p11 }
 0x8f8   : > { %p2433_p7 = por %p2432_p12, %p2431_p4 }
 0x8f9   : > { %p2429_p3 = pneg %p2428_p2 }
 0x8fa   : > { %p2435_p13 = por %p2434_p8, %p2433_p7 }
 0x8fc   : > { %p2436_p1 = pnand %p2435_p13, %p2429_p3 }
 0x8fe   : > { %2439 = shalt.err (!%p2436_p1)
}
 0x8ff   : > { %s2499_s17 = smov 128   ;;  %s2500_s30 = smov 8  }
 0x900   : > { %2173 = dma.vmem_to_hbm [thread:$0]  (%p3068_p11), %s2947_s28, 256, %s2945_s16, %s2950_s24, %s2499_s17, %s2499_s17, %s2500_s30  }
 0x901 PF: > { %s3069_s25 = sld [smem:[#allocation19_spill]]  ;;  %s3070_s0 = sld [smem:[#allocation16_spill]] }
 0x902   : > { %s3071_s1 = sld [smem:[#allocation23_spill]] }
 0x907   : > { %p2205_p6 = scmp.ge.s32.totalorder %s3069_s25, 2  ;;  %s1733_s3 = sand.u32 1, %s3070_s0  }
 0x908   : > { %p3072_p9 = scmp.ne.s32.totalorder %s3071_s1, 0  ;;  %s1734_s18 = scalar_lea.sflag [#allocation4], %s1733_s3 }
 0x90a   : > { %p2192_p5 = pnand %p2205_p6, %p3072_p9 }
 0x90c   : > { %2469 = dma.done.wait (!%p2192_p5), %s1734_s18, 256  }
 0x90d   : > { %2471 = vsyncadd (!%p2192_p5), %s1734_s18, 4294967040  ;;  %s3073_s21 = sld [smem:[#allocation20_spill]]  ;;  %s3074_s0 = sld [smem:[#allocation17_spill]] }
 0x90e   : > { %s3075_s30 = sld [smem:[#allocation18_spill]]  ;;  %s3076_s20 = sld [smem:[#allocation21_spill]] }
 0x913   : > { %p32_p0 = scmp.ge.s32.totalorder %s3073_s21, 4  }
 0x915   :  { %34 = sbr.rel (!%p32_p0) target bundleno = 16 (0x10), region = 155 }
 0x91c   :  { %1739 = vsyncpa [#allocation3], 1 }
 0x91d   :  { %1741 = vsyncpa [#allocation3 + $0x1], 1 }
 0x91e   :  { %1742 = vsyncpa [#allocation6], 1 }
 0x91f   :  { %1743 = vsyncpa [#allocation9], 1 }
 0x920   :  { %1744 = vsyncpa [#allocation4], 1 }
 0x921   :  { %1746 = vsyncpa [#allocation4 + $0x1], 1 }

</bundles_post_ra>
